<compile_context>
chip_gen: v7x
topology: tpu7x:2x2x1
jax: 0.10.0
libtpu: 0.0.40
codegen_flags: <defaults>
</compile_context>

<pallas_src>
import functools
import math

import jax
import jax.numpy as jnp
from jax.experimental import pallas as pl
from jax.experimental.pallas import tpu as pltpu

SRC_PAD = 0  # stands in for onmt.constants.SRC_PAD


# ----------------------------------------------------------------------------
# Generation-dependent budgets / tiling helpers
# ----------------------------------------------------------------------------
def _pick_vmem_limit():
    """~3/4 of physical VMEM, capped at 100 MiB; 48 MiB fallback (v7x-safe)."""
    default = 48 * 1024 * 1024
    try:
        info = pltpu.get_tpu_info()
        for name in ("vmem_capacity_bytes", "vmem_size_bytes", "vmem_bytes"):
            phys = getattr(info, name, None)
            if isinstance(phys, int) and phys > 0:
                return int(min(100 * 1024 * 1024, (phys * 3) // 4))
    except Exception:
        pass
    return default


_VMEM_LIMIT = _pick_vmem_limit()
# Bigger row tiles amortize per-step overhead where VMEM allows (v5e/v6e).
_ROW_TARGET = 1024 if _VMEM_LIMIT >= 80 * 1024 * 1024 else 512


def _cp(semantics):
    return pltpu.CompilerParams(dimension_semantics=semantics,
                                vmem_limit_bytes=_VMEM_LIMIT)


def _round_up(n, m):
    return -(-n // m) * m


def _row_plan(n, target=_ROW_TARGET):
    """(row_tile, padded_rows): padded % tile == 0; tile 8-aligned or == padded."""
    if n <= target:
        pad = _round_up(n, 8)
        return pad, pad
    return target, _round_up(n, target)


def _pad_rows(x, n_pad):
    n = x.shape[0]
    if n_pad == n:
        return x
    return jnp.pad(x, ((0, n_pad - n), (0, 0)))


def _seq_tile(t, target=512):
    if t <= target:
        return t
    for tt in range(target, 7, -1):
        if t % tt == 0 and tt % 8 == 0:
            return tt
    return t


def _inner_chunk(inner, target=1024):
    """K-tile for the FFN inner dim (lane-aligned divisor, or the full dim)."""
    if inner <= target:
        return inner
    for tt in range(target, 127, -1):
        if inner % tt == 0 and tt % 128 == 0:
            return tt
    return inner


def _heads_per_group(n_heads, dh):
    """Smallest head-group whose QKV width is a multiple of 128 lanes."""
    for hg in range(1, n_heads + 1):
        if n_heads % hg == 0 and (hg * dh) % 128 == 0:
            return hg
    return n_heads


def _qkv_col_perm(d, n_heads):
    """Column permutation: [q_g | k_g | v_g] contiguous per head-group."""
    dh = d // n_heads
    hg = _heads_per_group(n_heads, dh)
    ng = n_heads // hg
    perm = []
    for grp in range(ng):
        for sec in range(3):                       # q, k, v within each group
            for h in range(hg):
                start = sec * d + (grp * hg + h) * dh
                perm.extend(range(start, start + dh))
    return jnp.asarray(perm, dtype=jnp.int32)


# ----------------------------------------------------------------------------
# Pallas kernels
# ----------------------------------------------------------------------------
def _ln_linear_kernel(x_ref, g_ref, b_ref, w_ref, bias_ref, o_ref, *, eps):
    # Fused pre-norm LayerNorm + projection (LN -> fused QKV).
    x = x_ref[...]                                            # (tm, D) f32
    mu = jnp.mean(x, axis=-1, keepdims=True)
    xc = x - mu
    var = jnp.mean(xc * xc, axis=-1, keepdims=True)
    xn = xc * jax.lax.rsqrt(var + eps) * g_ref[...] + b_ref[...]
    y = jnp.dot(xn.astype(jnp.bfloat16), w_ref[...],
                preferred_element_type=jnp.float32)           # MXU bf16 -> f32
    o_ref[...] = (y + bias_ref[...]).astype(o_ref.dtype)      # bf16 store (QKV)


def _attn_kernel(qkv_ref, bias_ref, res_ref, wo_ref, bo_ref, o_ref, *,
                 scale, hg, dh):
    # One program per (batch, head-group).  The head-group axis is a reduction:
    # head_out @ wo_slice accumulates into the resident (T, D) f32 output block
    # (residual + output-proj bias added at group 0).  No (B,T,D) intermediate
    # ever touches HBM and the store stays lane-dense.
    g = pl.program_id(1)
    qkv = qkv_ref[...]                                        # (T, 3*hg*dh) bf16
    bias = bias_ref[...]                                      # (1, T) additive mask
    w = hg * dh
    q_all, k_all, v_all = qkv[:, :w], qkv[:, w:2 * w], qkv[:, 2 * w:]
    outs = []
    # TODO(synk): for long sequences (T >= ~2048) tile the KV dim flash-style
    # instead of materializing the full (T, T) scores per head.
    for h in range(hg):
        q = q_all[:, h * dh:(h + 1) * dh]
        k = k_all[:, h * dh:(h + 1) * dh]
        v = v_all[:, h * dh:(h + 1) * dh]
        s = jax.lax.dot_general(q, k, (((1,), (1,)), ((), ())),
                                preferred_element_type=jnp.float32)  # (T, T)
        s = s * scale + bias                   # -1e9 on PAD keys (single add)
        m = jnp.max(s, axis=-1, keepdims=True)
        p = jnp.exp(s - m)
        denom = jnp.sum(p, axis=-1, keepdims=True)
        attn = p * pl.reciprocal(denom, approx=True)          # EUP divide
        outs.append(jnp.dot(attn.astype(jnp.bfloat16), v,
                            preferred_element_type=jnp.float32))     # (T, dh)
    head_out = outs[0] if hg == 1 else jnp.concatenate(outs, axis=-1)
    partial = jnp.dot(head_out.astype(jnp.bfloat16), wo_ref[...],
                      preferred_element_type=jnp.float32)     # (T, D)

    @pl.when(g == 0)
    def _():
        o_ref[...] = res_ref[...] + bo_ref[...]
    o_ref[...] += partial


def _ffn_kernel(x_ref, g_ref, b_ref, w1_ref, b1_ref, w2_ref, b2_ref, o_ref,
                xn_ref, acc_ref, *, eps):
    # Fused LN -> relu(. @ w1 + b1) -> . @ w2 -> + b2 + x, K-tiled over `inner`.
    # LN(x) is computed once per row tile (k == 0) and cached in bf16 VMEM.
    k = pl.program_id(1)

    @pl.when(k == 0)
    def _():
        x = x_ref[...]                                        # (tm, D) f32
        mu = jnp.mean(x, axis=-1, keepdims=True)
        xc = x - mu
        var = jnp.mean(xc * xc, axis=-1, keepdims=True)
        xn = xc * jax.lax.rsqrt(var + eps) * g_ref[...] + b_ref[...]
        xn_ref[...] = xn.astype(jnp.bfloat16)
        acc_ref[...] = jnp.zeros_like(acc_ref)

    h = jnp.dot(xn_ref[...], w1_ref[...],
                preferred_element_type=jnp.float32) + b1_ref[...]
    h = jnp.maximum(h, 0.0)
    acc_ref[...] += jnp.dot(h.astype(jnp.bfloat16), w2_ref[...],
                            preferred_element_type=jnp.float32)

    @pl.when(k == pl.num_programs(1) - 1)
    def _():
        o_ref[...] = (acc_ref[...] + b2_ref[...] + x_ref[...]).astype(o_ref.dtype)


def _ln_transpose_kernel(x_ref, g_ref, b_ref, o_ref, *, eps):
    # Post-process LayerNorm; the (T, B, D) layout change happens in the
    # out_spec index_map, not here (store stays lane-dense on D).
    x = x_ref[...]
    mu = jnp.mean(x, axis=-1, keepdims=True)
    xc = x - mu
    var = jnp.mean(xc * xc, axis=-1, keepdims=True)
    o_ref[...] = (xc * jax.lax.rsqrt(var + eps) * g_ref[...]
                  + b_ref[...]).astype(o_ref.dtype)


# ----------------------------------------------------------------------------
# Wrappers around pallas_call
# ----------------------------------------------------------------------------
def ln_linear(x, g, b, w, bias, *, out_dtype=jnp.float32, eps=1e-5):
    n, din = x.shape
    dout = w.shape[1]
    tm, n_pad = _row_plan(n)
    xp = _pad_rows(x, n_pad)
    # TODO(synk): at extreme D, single-buffer the resident weight
    # (pipeline_mode=pl.Buffered(1)) to trim VMEM further on v7x.
    out = pl.pallas_call(
        functools.partial(_ln_linear_kernel, eps=eps),
        out_shape=jax.ShapeDtypeStruct((n_pad, dout), out_dtype),
        grid=(n_pad // tm,),
        in_specs=[
            pl.BlockSpec((tm, din), lambda i: (i, 0)),
            pl.BlockSpec((1, din), lambda i: (0, 0)),
            pl.BlockSpec((1, din), lambda i: (0, 0)),
            pl.BlockSpec((din, dout), lambda i: (0, 0)),      # resident weight
            pl.BlockSpec((1, dout), lambda i: (0, 0)),
        ],
        out_specs=pl.BlockSpec((tm, dout), lambda i: (i, 0)),
        compiler_params=_cp(("parallel",)),
    )(xp, g.reshape(1, din), b.reshape(1, din), w, bias.reshape(1, dout))
    return out if n_pad == n else out[:n]


def attention(qkv, mask_bias, residual, wo, bo, *, n_heads, model_size):
    # qkv: (B, T, 3D) bf16 head-group-major; mask_bias: (B, 1, T) f32 (-1e9 on PAD)
    # residual: (B, T, D) f32.  Output: residual + bo + attn @ wo, f32.
    b, t, _ = qkv.shape
    d = model_size
    dh = d // n_heads
    hg = _heads_per_group(n_heads, dh)
    ng = n_heads // hg
    scale = 1.0 / math.sqrt(dh)
    return pl.pallas_call(
        functools.partial(_attn_kernel, scale=scale, hg=hg, dh=dh),
        out_shape=jax.ShapeDtypeStruct((b, t, d), jnp.float32),
        grid=(b, ng),
        in_specs=[
            pl.BlockSpec((None, t, 3 * hg * dh), lambda i, g: (i, 0, g)),
            pl.BlockSpec((None, 1, t), lambda i, g: (i, 0, 0)),
            pl.BlockSpec((None, t, d), lambda i, g: (i, 0, 0)),
            pl.BlockSpec((hg * dh, d), lambda i, g: (g, 0)),  # wo row-slab per group
            pl.BlockSpec((1, d), lambda i, g: (0, 0)),
        ],
        out_specs=pl.BlockSpec((None, t, d), lambda i, g: (i, 0, 0)),
        compiler_params=_cp(("parallel", "arbitrary")),
    )(qkv, mask_bias, residual, wo, bo.reshape(1, d))


def ffn(x, g, b, w1, b1, w2, b2, eps=1e-5):
    n, d = x.shape
    inner = w1.shape[1]
    tm, n_pad = _row_plan(n)
    tk = _inner_chunk(inner)
    xp = _pad_rows(x, n_pad)
    out = pl.pallas_call(
        functools.partial(_ffn_kernel, eps=eps),
        out_shape=jax.ShapeDtypeStruct((n_pad, d), jnp.float32),
        grid=(n_pad // tm, inner // tk),
        in_specs=[
            pl.BlockSpec((tm, d), lambda i, k: (i, 0)),
            pl.BlockSpec((1, d), lambda i, k: (0, 0)),
            pl.BlockSpec((1, d), lambda i, k: (0, 0)),
            pl.BlockSpec((d, tk), lambda i, k: (0, k)),       # w1 column chunk
            pl.BlockSpec((1, tk), lambda i, k: (0, k)),
            pl.BlockSpec((tk, d), lambda i, k: (k, 0)),       # w2 row chunk
            pl.BlockSpec((1, d), lambda i, k: (0, 0)),
        ],
        out_specs=pl.BlockSpec((tm, d), lambda i, k: (i, 0)),
        scratch_shapes=[pltpu.VMEM((tm, d), jnp.bfloat16),    # cached LN(x)
                        pltpu.VMEM((tm, d), jnp.float32)],    # f32 accumulator
        compiler_params=_cp(("parallel", "arbitrary")),
    )(xp, g.reshape(1, d), b.reshape(1, d), w1, b1.reshape(1, inner),
      w2, b2.reshape(1, d))
    return out if n_pad == n else out[:n]


def layernorm_transposed(x, g, b, eps=1e-5):
    # Input (B, T, D) -> output (T, B, D): the transpose is folded into the
    # output index_map, so no extra XLA read+write of the activations.
    bsz, t, d = x.shape
    tq = _seq_tile(t)
    return pl.pallas_call(
        functools.partial(_ln_transpose_kernel, eps=eps),
        out_shape=jax.ShapeDtypeStruct((t, bsz, d), jnp.float32),
        grid=(bsz, t // tq),
        in_specs=[
            pl.BlockSpec((None, tq, d), lambda i, j: (i, j, 0)),
            pl.BlockSpec((1, d), lambda i, j: (0, 0)),
            pl.BlockSpec((1, d), lambda i, j: (0, 0)),
        ],
        out_specs=pl.BlockSpec((tq, None, d), lambda i, j: (j, i, 0)),
        compiler_params=_cp(("parallel", "parallel")),
    )(x, g.reshape(1, d), b.reshape(1, d))


# ----------------------------------------------------------------------------
# Model glue (pre-norm transformer encoder, 'text' input type, eval mode)
# ----------------------------------------------------------------------------
def encoder_layer(x, mask_bias, p, n_heads):
    b, t, d = x.shape
    xf = x.reshape(b * t, d)

    # --- self-attention block (pre-norm) ---
    # fused LN + QKV projection, emitted bf16 (consumed only as bf16)
    qkv = ln_linear(xf, p["ln_attn_g"], p["ln_attn_b"], p["wqkv"], p["bqkv"],
                    out_dtype=jnp.bfloat16)
    # attention + output projection + residual, fully fused
    x1 = attention(qkv.reshape(b, t, 3 * d), mask_bias, x,
                   p["wo"], p["bo"], n_heads=n_heads, model_size=d)

    # --- feed-forward block (pre-norm): fused LN + K-tiled FFN + residual ---
    x2 = ffn(x1.reshape(b * t, d), p["ln_ffn_g"], p["ln_ffn_b"],
             p["w1"], p["b1"], p["w2"], p["b2"])
    return x2.reshape(b, t, d)


def transformer_encoder_forward(input_ids, params, *, model_size, n_heads):
    b, t = input_ids.shape
    mask_src = (input_ids == SRC_PAD)[:, None, :]             # (B, 1, T) bool
    mask_bias = mask_src.astype(jnp.float32) * (-1e9)         # additive key mask

    # Embedding lookup + sqrt(d_model) scale + positional encoding: left to
    # XLA so the elementwise ops fuse with the gather.
    emb = jnp.take(params["word_lut"], input_ids, axis=0) * math.sqrt(model_size)
    emb = emb + params["pe"][:t][None, :, :]                  # (B, T, D)

    # preprocess_layer: sequence='d' (dropout) -> identity at eval
    x = emb
    for lp in params["layers"]:
        x = encoder_layer(x, mask_bias, lp, n_heads)

    # postprocess_layer: sequence='n' (LayerNorm), written directly as (T,B,D)
    context = layernorm_transposed(x, params["ln_out_g"], params["ln_out_b"])
    return {"context": context, "src_mask": mask_src}


# ----------------------------------------------------------------------------
# Deterministic parameter construction (synthetic; no checkpoint loading)
# ----------------------------------------------------------------------------
def sinusoidal_pe(max_len, d_model):
    pos = jnp.arange(max_len, dtype=jnp.float32)[:, None]
    i = jnp.arange(0, d_model, 2, dtype=jnp.float32)[None, :]
    div = jnp.exp(-jnp.log(10000.0) * i / d_model)
    pe = jnp.zeros((max_len, d_model), dtype=jnp.float32)
    pe = pe.at[:, 0::2].set(jnp.sin(pos * div))
    pe = pe.at[:, 1::2].set(jnp.cos(pos * div))
    return pe


def init_params(key, vocab, model_size, inner_size, n_layers, n_heads, max_len):
    def xavier(k, fan_in, fan_out):
        bound = math.sqrt(6.0 / (fan_in + fan_out))
        # NOTE: weights stored as (in, out); a PyTorch checkpoint loader must
        # transpose nn.Linear's (out, in) weights, concatenate q/k/v and apply
        # the same head-group-major column permutation used here.
        return jax.random.uniform(k, (fan_in, fan_out), jnp.float32, -bound, bound)

    perm = _qkv_col_perm(model_size, n_heads)
    keys = jax.random.split(key, 1 + n_layers)
    params = {
        "word_lut": 0.02 * jax.random.normal(keys[0], (vocab, model_size), jnp.float32),
        "pe": sinusoidal_pe(max_len, model_size),
        "ln_out_g": jnp.ones((model_size,), jnp.float32),
        "ln_out_b": jnp.zeros((model_size,), jnp.float32),
        "layers": [],
    }
    for l in range(n_layers):
        lk = jax.random.split(keys[1 + l], 6)
        wq = xavier(lk[0], model_size, model_size)
        wk = xavier(lk[1], model_size, model_size)
        wv = xavier(lk[2], model_size, model_size)
        wqkv = jnp.concatenate([wq, wk, wv], axis=1)[:, perm]   # head-group-major
        bqkv = jnp.zeros((3 * model_size,), jnp.float32)[perm]
        params["layers"].append({
            "ln_attn_g": jnp.ones((model_size,), jnp.float32),
            "ln_attn_b": jnp.zeros((model_size,), jnp.float32),
            "wqkv": wqkv.astype(jnp.bfloat16),   # bf16 MXU operand, f32 accum
            "bqkv": bqkv,
            "wo": xavier(lk[3], model_size, model_size).astype(jnp.bfloat16),
            "bo": jnp.zeros((model_size,), jnp.float32),
            "ln_ffn_g": jnp.ones((model_size,), jnp.float32),
            "ln_ffn_b": jnp.zeros((model_size,), jnp.float32),
            "w1": xavier(lk[4], model_size, inner_size).astype(jnp.bfloat16),
            "b1": jnp.zeros((inner_size,), jnp.float32),
            "w2": xavier(lk[5], inner_size, model_size).astype(jnp.bfloat16),
            "b2": jnp.zeros((model_size,), jnp.float32),
        })
    return params


# TODO(synk): audio branches (Linear / Conv2d+BatchNorm downsampling), language
# embeddings, reversible encoder and LSH attention paths are not exercised by
# the 'text' forward here.

if __name__ == "__main__":
    BATCH, SEQ = 2, 8
    MODEL_SIZE, N_HEADS, INNER_SIZE, LAYERS = 32, 4, 64, 2
    VOCAB = 50

    key = jax.random.PRNGKey(0)
    pkey, ikey = jax.random.split(key)
    params = init_params(pkey, VOCAB, MODEL_SIZE, INNER_SIZE, LAYERS, N_HEADS,
                         max_len=SEQ)

    # token ids in [2, VOCAB), with trailing PAD (=0) tokens in the second row
    input_ids = jax.random.randint(ikey, (BATCH, SEQ), 2, VOCAB, dtype=jnp.int32)
    input_ids = input_ids.at[1, -3:].set(SRC_PAD)

    out = transformer_encoder_forward(
        input_ids, params, model_size=MODEL_SIZE, n_heads=N_HEADS
    )
    jax.block_until_ready(out["context"])
    jax.block_until_ready(out["src_mask"])

    assert out["context"].shape == (SEQ, BATCH, MODEL_SIZE)
    assert out["src_mask"].shape == (BATCH, 1, SEQ)
    assert bool(jnp.all(jnp.isfinite(out["context"])))
    print("KERNEL_OK")
</pallas_src>

<mosaic_0001>
module attributes {stable_mosaic.version = 11 : i64} {
  func.func @_ln_linear_kernel(%arg0: i32, %arg1: memref<16x32xf32, #tpu.memory_space<vmem>>, %arg2: memref<1x32xf32, #tpu.memory_space<vmem>>, %arg3: memref<1x32xf32, #tpu.memory_space<vmem>>, %arg4: memref<32x96xbf16, #tpu.memory_space<vmem>>, %arg5: memref<1x96xf32, #tpu.memory_space<vmem>>, %arg6: memref<16x96xbf16, #tpu.memory_space<vmem>>) attributes {dimension_semantics = [#tpu.dimension_semantics<parallel>], iteration_bounds = array<i64: 1>, scalar_prefetch = 0 : i64, scratch_operands = 0 : i64, tpu.core_type = #tpu.core_type<tc>, window_params = [{transform_indices = @transform_0, window_bounds = array<i64: 16, 32>}, {pipeline_mode = #tpu.pipeline_mode<synchronous>, transform_indices = @transform_1, window_bounds = array<i64: 1, 32>}, {pipeline_mode = #tpu.pipeline_mode<synchronous>, transform_indices = @transform_2, window_bounds = array<i64: 1, 32>}, {pipeline_mode = #tpu.pipeline_mode<synchronous>, transform_indices = @transform_3, window_bounds = array<i64: 32, 96>}, {pipeline_mode = #tpu.pipeline_mode<synchronous>, transform_indices = @transform_4, window_bounds = array<i64: 1, 96>}, {transform_indices = @transform_5, window_bounds = array<i64: 16, 96>}]} {
    %c0 = arith.constant 0 : index
    %c0_0 = arith.constant 0 : index
    %0 = vector.load %arg1[%c0, %c0_0] : memref<16x32xf32, #tpu.memory_space<vmem>>, vector<16x32xf32>
    %cst = arith.constant dense<0.000000e+00> : vector<16xf32>
    %1 = vector.multi_reduction <add>, %0, %cst [1] : vector<16x32xf32> to vector<16xf32>
    %2 = vector.shape_cast %1 : vector<16xf32> to vector<16x1xf32>
    %cst_1 = arith.constant 3.200000e+01 : f32
    %3 = vector.broadcast %cst_1 : f32 to vector<16x1xf32>
    %4 = arith.divf %2, %3 : vector<16x1xf32>
    %5 = vector.broadcast %4 : vector<16x1xf32> to vector<16x32xf32>
    %6 = arith.subf %0, %5 : vector<16x32xf32>
    %7 = arith.mulf %6, %6 : vector<16x32xf32>
    %cst_2 = arith.constant dense<0.000000e+00> : vector<16xf32>
    %8 = vector.multi_reduction <add>, %7, %cst_2 [1] : vector<16x32xf32> to vector<16xf32>
    %9 = vector.shape_cast %8 : vector<16xf32> to vector<16x1xf32>
    %cst_3 = arith.constant 3.200000e+01 : f32
    %10 = vector.broadcast %cst_3 : f32 to vector<16x1xf32>
    %11 = arith.divf %9, %10 : vector<16x1xf32>
    %cst_4 = arith.constant 9.99999974E-6 : f32
    %12 = vector.broadcast %cst_4 : f32 to vector<16x1xf32>
    %13 = arith.addf %11, %12 : vector<16x1xf32>
    %14 = math.rsqrt %13 : vector<16x1xf32>
    %15 = vector.broadcast %14 : vector<16x1xf32> to vector<16x32xf32>
    %16 = arith.mulf %6, %15 : vector<16x32xf32>
    %c0_5 = arith.constant 0 : index
    %c0_6 = arith.constant 0 : index
    %17 = vector.load %arg2[%c0_5, %c0_6] : memref<1x32xf32, #tpu.memory_space<vmem>>, vector<1x32xf32>
    %18 = vector.broadcast %17 : vector<1x32xf32> to vector<16x32xf32>
    %19 = arith.mulf %16, %18 : vector<16x32xf32>
    %c0_7 = arith.constant 0 : index
    %c0_8 = arith.constant 0 : index
    %20 = vector.load %arg3[%c0_7, %c0_8] : memref<1x32xf32, #tpu.memory_space<vmem>>, vector<1x32xf32>
    %21 = vector.broadcast %20 : vector<1x32xf32> to vector<16x32xf32>
    %22 = arith.addf %19, %21 : vector<16x32xf32>
    %23 = arith.truncf %22 : vector<16x32xf32> to vector<16x32xbf16>
    %c0_9 = arith.constant 0 : index
    %c0_10 = arith.constant 0 : index
    %24 = vector.load %arg4[%c0_9, %c0_10] : memref<32x96xbf16, #tpu.memory_space<vmem>>, vector<32x96xbf16>
    %cst_11 = arith.constant dense<0.000000e+00> : vector<16x96xf32>
    %25 = tpu.matmul %23, %24, %cst_11 {dimension_numbers = #tpu.dot_dimension_numbers<[1], [0], [0], [1], [0, 0, 1, 1], [], []>} : vector<16x32xbf16>, vector<32x96xbf16>, vector<16x96xf32> -> vector<16x96xf32>
    %c0_12 = arith.constant 0 : index
    %c0_13 = arith.constant 0 : index
    %26 = vector.load %arg5[%c0_12, %c0_13] : memref<1x96xf32, #tpu.memory_space<vmem>>, vector<1x96xf32>
    %27 = vector.broadcast %26 : vector<1x96xf32> to vector<16x96xf32>
    %28 = arith.addf %25, %27 : vector<16x96xf32>
    %29 = arith.truncf %28 : vector<16x96xf32> to vector<16x96xbf16>
    %c0_14 = arith.constant 0 : index
    %c0_15 = arith.constant 0 : index
    %30 = vector.load %arg6[%c0_14, %c0_15] : memref<16x96xbf16, #tpu.memory_space<vmem>>, vector<16x96xbf16>
    tpu.vector_store %arg6[%c0_14, %c0_15], %29 {strides = array<i32>} : memref<16x96xbf16, #tpu.memory_space<vmem>>, vector<16x96xbf16>,
    return
  }
  func.func @transform_0(%arg0: i32) -> (i32, i32) {
    %c0_i32 = arith.constant 0 : i32
    %c0_i32_0 = arith.constant 0 : i32
    return %arg0, %c0_i32 : i32, i32
  }
  func.func @transform_1(%arg0: i32) -> (i32, i32) {
    %c0_i32 = arith.constant 0 : i32
    %c0_i32_0 = arith.constant 0 : i32
    %c0_i32_1 = arith.constant 0 : i32
    return %c0_i32, %c0_i32_0 : i32, i32
  }
  func.func @transform_2(%arg0: i32) -> (i32, i32) {
    %c0_i32 = arith.constant 0 : i32
    %c0_i32_0 = arith.constant 0 : i32
    %c0_i32_1 = arith.constant 0 : i32
    return %c0_i32, %c0_i32_0 : i32, i32
  }
  func.func @transform_3(%arg0: i32) -> (i32, i32) {
    %c0_i32 = arith.constant 0 : i32
    %c0_i32_0 = arith.constant 0 : i32
    %c0_i32_1 = arith.constant 0 : i32
    return %c0_i32, %c0_i32_0 : i32, i32
  }
  func.func @transform_4(%arg0: i32) -> (i32, i32) {
    %c0_i32 = arith.constant 0 : i32
    %c0_i32_0 = arith.constant 0 : i32
    %c0_i32_1 = arith.constant 0 : i32
    return %c0_i32, %c0_i32_0 : i32, i32
  }
  func.func @transform_5(%arg0: i32) -> (i32, i32) {
    %c0_i32 = arith.constant 0 : i32
    %c0_i32_0 = arith.constant 0 : i32
    return %arg0, %c0_i32 : i32, i32
  }
}

</mosaic_0001>

<bundles_post_ra>
// kernel: tpu_custom_call.1
= control target key start
LH: loop header
LB: loop body
LE: loop exit
PB: predicated region body
PF: predicated region fallthrough
CT: control target
= control target key end

     0   :  { %10 = vsyncpa [#allocation3], 0  ;;  %s398_s0 = inlined_call_operand.hbm [shape: f32[16,32], index: 0, kind: input, shape index: {}]   ;;  %s399_s1 = inlined_call_operand.vmem [shape: f32[1,32], index: 1, kind: input, shape index: {}]   ;;  %s400_s2 = inlined_call_operand.vmem [shape: f32[1,32], index: 2, kind: input, shape index: {}]   ;;  %s401_s3 = inlined_call_operand.hbm [shape: bf16[32,96], index: 3, kind: input, shape index: {}]   ;;  %s402_s4 = inlined_call_operand.vmem [shape: f32[1,96], index: 4, kind: input, shape index: {}]   ;;  %s403_s5 = inlined_call_operand.hbm [shape: bf16[16,96], index: 5, kind: output, shape index: {}]  }
   0x1   :  { %11 = vsyncpa [#allocation6], 0 }
   0x2   :  { %12 = vsyncpa [#allocation4], 0  ;;  %s303_s18 = smov [#allocation2]   ;;  %s231_s22 = scalar_lea.hbm %s398_s0, 256 }
   0x3   :  { %s18_s19 = sshll.u32 %s303_s18, 4  ;;  %p232_p0 = scmp.ne.s32.totalorder %s398_s0, %s231_s22  ;;  %s19_s19 = int_to_ptr.vmem [resolvable:$true] %s18_s19 }
   0x4   :  { %p235_p1 = scmp.lt.u32.totalorder %s231_s22, %s398_s0 }
   0x6   :  { %p237_p2 = pnand %p235_p1, %p232_p0 }
   0x8   :  { %240 = shalt.err (!%p237_p2)
}
   0x9   :  { %s241_s27 = scalar_lea.vmem %s19_s19, 256  ;;  %p246_p4 = scmp.lt.s32.totalorder %s19_s19, %s19_s19 }
   0xa   :  { %p242_p3 = scmp.ne.s32.totalorder %s19_s19, %s241_s27  ;;  %p247_p5 = scmp.lt.s32.totalorder %s241_s27, %s241_s27 }
   0xc   :  { %p248_p6 = por %p247_p5, %p246_p4 }
   0xe   :  { %p249_p7 = pnand %p248_p6, %p242_p3 }
  0x10   :  { %252 = shalt.err (!%p249_p7)
}
  0x11   :  { %s304_s28 = smov 128   ;;  %s305_s29 = smov 8  }
  0x12   :  { %24 = dma.hbm_to_vmem [thread:$0]  %s398_s0, 256, %s19_s19, [#allocation3], %s304_s28, %s304_s28, %s305_s29  }
  0x13   :  { %s306_s7 = smov [#allocation5]   ;;  %s253_s11 = scalar_lea.hbm %s401_s3, 256 }
  0x14   :  { %s34_s8 = sshll.u32 %s306_s7, 4  ;;  %p254_p8 = scmp.ne.s32.totalorder %s401_s3, %s253_s11  ;;  %s35_s8 = int_to_ptr.vmem [resolvable:$true] %s34_s8 }
  0x15   :  { %p257_p9 = scmp.lt.u32.totalorder %s253_s11, %s401_s3 }
  0x17   :  { %p259_p10 = pnand %p257_p9, %p254_p8 }
  0x19   :  { %262 = shalt.err (!%p259_p10)
}
  0x1a   :  { %s263_s16 = scalar_lea.vmem %s35_s8, 256  ;;  %p268_p12 = scmp.lt.s32.totalorder %s35_s8, %s35_s8 }
  0x1b   :  { %p264_p11 = scmp.ne.s32.totalorder %s35_s8, %s263_s16  ;;  %p269_p13 = scmp.lt.s32.totalorder %s263_s16, %s263_s16 }
  0x1d   :  { %p270_p0 = por %p269_p13, %p268_p12 }
  0x1f   :  { %p271_p1 = pnand %p270_p0, %p264_p11 }
  0x21   :  { %274 = shalt.err (!%p271_p1)
}
  0x22   :  { %s307_s0 = smov 64   ;;  %s308_s17 = smov 4  }
  0x23   :  { %40 = dma.hbm_to_vmem [thread:$0]  %s401_s3, 256, %s35_s8, [#allocation6], %s307_s0, %s307_s0, %s308_s17  }
  0x24   :  { %297 = dma.done.wait [#allocation3], 256  }
  0x25   :  { %298 = vsyncadd [#allocation3], 4294967040 }
  0x26   :  { %299 = dma.done.wait [#allocation6], 256  }
  0x27   :  { %300 = vsyncadd [#allocation6], 4294967040  ;;  %vm52_vm0 = vcmask 261120   ;;  %v50_v0 = vld [vmem:[#allocation2] sm:$0xff]  ;;  %v51_v1 = vld [vmem:[#allocation2 + $0x8] sm:$0xff]  ;;  %v309_v15 = vmov 0.0  }
  0x28   :  { %v53_v2 = vsel %vm52_vm0, %v50_v0, 0.0  ;;  %v56_v3 = vsel %vm52_vm0, %v51_v1, 0.0  ;;  %v225_v14 = vld [vmem:[#allocation5] sm:$0xff]   ;;  %208 = vmatprep.subr.bf16.mxu0 %v309_v15  ;;  %v226_v16 = vld [vmem:[#allocation5 + $0x8] sm:$0xff]   ;;  %vm310_vm1 = vmmov 0   ;;  %vm174_vm2 = vcmask 781312  }
  0x29   :  { %54 = vadd.xlane.f32.xlu0 %v53_v2  ;;  %209 = vmatpush3.bf16.msra.mxu0 %v225_v14  ;;  %v195_v25 = vld [vmem:[%s399_s1] ss:$0 sm:$0xff]  ;;  %s311_s1 = smov [#allocation7]  }
  0x2a   :  { %212 = vmatprep.mubr.msk.bf16.mxu0 %vm310_vm1, %v309_v15  ;;  %210 = vmatprep.subr.bf16.mxu0 %v309_v15  ;;  %v196_v29 = vld [vmem:[%s400_s2] ss:$0 sm:$0xff]  ;;  %s182_s25 = sshll.u32 %s311_s1, 4  ;;  %s183_s25 = int_to_ptr.vmem [resolvable:$true] %s182_s25 }
  0x2b   :  { %v197_v34 = vld [vmem:[%s402_s4] ss:$0 sm:$0xff]  ;;  %s275_s2 = scalar_lea.vmem %s183_s25, 128  ;;  %p280_p3 = scmp.lt.s32.totalorder %s183_s25, %s183_s25 }
  0x2c   :  { %p276_p2 = scmp.ne.s32.totalorder %s183_s25, %s275_s2  ;;  %p281_p4 = scmp.lt.s32.totalorder %s275_s2, %s275_s2 }
  0x2d   :  { %57 = vadd.xlane.f32.xlu0 %v56_v3  ;;  %211 = vmatpush3.bf16.msra.mxu0 %v226_v16 }
  0x2e   :  { %p282_p5 = por %p281_p4, %p280_p3 }
  0x30   :  { %p283_p6 = pnand %p282_p5, %p276_p2 }
  0xb6   :  { %v55_v4 = vpop.xlane.xlu0 %54 }
  0xb7   :  { %v60_v5 = vmul.f32 0.03125, %v55_v4 }
  0xb9   :  { %v62_v6 = vsub.f32 %v50_v0, %v60_v5 }
  0xba   :  { %v58_v7 = vpop.xlane.xlu0 %57 }
  0xbb   :  { %v61_v8 = vmul.f32 0.03125, %v58_v7  ;;  %v64_v9 = vmul.f32 %v62_v6, %v62_v6 }
  0xbd   :  { %v63_v10 = vsub.f32 %v51_v1, %v61_v8  ;;  %v66_v11 = vsel %vm52_vm0, %v64_v9, 0.0 }
  0xbe   :  { %67 = vadd.xlane.f32.xlu1 %v66_v11 }
  0xbf   :  { %v65_v12 = vmul.f32 %v63_v10, %v63_v10 }
  0xc1   :  { %v69_v13 = vsel %vm52_vm0, %v65_v12, 0.0 }
  0xc2   :  { %70 = vadd.xlane.f32.xlu1 %v69_v13 }
 0x14b   :  { %v68_v17 = vpop.xlane.xlu1 %67 }
 0x14c   :  { %v72_v18 = vmul.f32 0.03125, %v68_v17 }
 0x14e   :  { %v74_v19 = vadd.f32 1e-05, %v72_v18 }
 0x14f   :  { %v71_v20 = vpop.xlane.xlu1 %70 }
 0x150   :  { %227 = vrsqrt.f32 %v74_v19  ;;  %v73_v21 = vmul.f32 0.03125, %v71_v20 }
 0x152   :  { %v75_v22 = vadd.f32 1e-05, %v73_v21 }
 0x154   :  { %229 = vrsqrt.f32 %v75_v22 }
 0x15a   :  { %v228_v23 = vpop.eup %227 }
 0x15b   :  { %v78_v24 = vmul.f32 %v228_v23, %v62_v6 }
 0x15d   :  { %v87_v28 = vmul.f32 %v195_v25, %v78_v24 }
 0x15e   :  { %v230_v26 = vpop.eup %229 }
 0x15f   :  { %v79_v27 = vmul.f32 %v230_v26, %v63_v10  ;;  %v96_v31 = vadd.f32 %v196_v29, %v87_v28 }
 0x161   :  { %v88_v30 = vmul.f32 %v195_v25, %v79_v27 }
 0x163   :  { %v97_v32 = vadd.f32 %v196_v29, %v88_v30 }
 0x165   :  { %v98_v33 = vpack.c.bf16 %v97_v32, %v96_v31 }
 0x167   :  { %213 = vmatmul.mubr.msk.bf16.vlgmr.msra.gmra.mrb[0].mxu0 %vm52_vm0, %v98_v33 }
 0x23a   :  { %v159_v35 = vpop.f32.mrb[0].mxu0 }
 0x23b   :  { %v160_v36 = vadd.f32 %v197_v34, %v159_v35  ;;  %v214_v37 = vpop.f32.mrb[1].mxu0 }
 0x23c   :  { %v162_v38 = vpop.f32.mrb[2].mxu0 }
 0x23d   :  { %v203_v39 = vpack.c.bf16 %v160_v36, %v160_v36  ;;  %v163_v40 = vadd.f32 %v197_v34, %v162_v38  ;;  %v215_v41 = vpop.f32.mrb[3].mxu0 }
 0x23f   :  { %v204_v42 = vpack.c.bf16 %v163_v40, %v163_v40  ;;  %175 = vst.msk [vmem:[#allocation7] sm:$0xf] %vm174_vm2, %v203_v39 }
 0x241   :  { %176 = vst.msk [vmem:[#allocation7 + $0x4] sm:$0xf] %vm174_vm2, %v204_v42 }
 0x242   :  { %286 = shalt.err (!%p283_p6)
}
 0x243   :  { %s287_s27 = scalar_lea.hbm %s403_s5, 128 }
 0x244   :  { %p288_p7 = scmp.ne.s32.totalorder %s403_s5, %s287_s27  ;;  %p291_p8 = scmp.lt.u32.totalorder %s287_s27, %s403_s5 }
 0x246   :  { %p293_p9 = pnand %p291_p8, %p288_p7 }
 0x248   :  { %296 = shalt.err (!%p293_p9)
}
 0x249   :  { %188 = dma.vmem_to_hbm [thread:$0]  %s183_s25, 128, %s403_s5, [#allocation4], %s307_s0, %s307_s0, %s308_s17  }
 0x24a   :  { %301 = dma.done.wait [#allocation4], 128  }
 0x24b   :  { %302 = vsyncadd [#allocation4], 4294967168 }
 0x24c   :  { %192 = vsyncpa [#allocation3], 1 }
 0x24d   :  { %193 = vsyncpa [#allocation6], 1 }
 0x24e   :  { %194 = vsyncpa [#allocation4], 1 }

</bundles_post_ra>
